<compile_context>
chip_gen: v5e
topology: v5e:2x2
jax: 0.10.0
libtpu: 0.0.40
codegen_flags: <defaults>
</compile_context>

<pallas_src>
import functools

import jax
import jax.numpy as jnp
from jax.experimental import pallas as pl
from jax.experimental.pallas import tpu as pltpu


def lstm_classifier_kernel(ids_ref, lens_ref, table_ref, whh_ref, b_ref,
                           out_ref, *, seq_len, batch):
    """Single-invocation fused kernel.

    ids_ref   : (S*Bp, 1) int32   entity ids, time-major flat (row = t*Bp + b)
    lens_ref  : (Bp, 1)   int32   sequence lengths (padded rows are 0)
    table_ref : (V, 4H)   f32     fused emb @ W_ih^T table
    whh_ref   : (H, 4H)   f32     W_hh^T
    b_ref     : (1, 4H)   f32     b_ih + b_hh
    out_ref   : (Bp, H)   f32     log-softmax logits (padded rows garbage)
    """
    vocab = table_ref.shape[0]
    hidden = whh_ref.shape[0]
    sb = seq_len * batch

    # ---- fused embedding gather + input projection (one MXU pass) ----
    ids = ids_ref[...]                                            # (S*Bp, 1)
    iota_v = jax.lax.broadcasted_iota(jnp.int32, (sb, vocab), 1)  # (S*Bp, V)
    onehot = (ids == iota_v).astype(jnp.float32)                  # (S*Bp, V)
    gx_all = (jnp.dot(onehot, table_ref[...],
                      preferred_element_type=jnp.float32)
              + b_ref[...])                                       # (S*Bp, 4H)

    lens_v = lens_ref[...]                                        # (Bp, 1)
    whh = whh_ref[...]                                            # (H, 4H)

    h = jnp.zeros((batch, hidden), jnp.float32)
    c = jnp.zeros((batch, hidden), jnp.float32)
    last = jnp.zeros((batch, hidden), jnp.float32)

    # Fully unrolled recurrence; only h @ W_hh^T + elementwise is serial.
    # batch == 8 so every slice below starts on a sublane-tile boundary.
    for t in range(seq_len):
        gates = gx_all[t * batch:(t + 1) * batch, :] + jnp.dot(
            h, whh, preferred_element_type=jnp.float32)           # (Bp, 4H)
        # PyTorch LSTM gate order: i, f, g, o.
        # One EUP tanh over the full gates vreg gives all three sigmoids:
        # sig(x) = 0.5 * (tanh(x/2) + 1); the g lanes of sig_all are unused.
        sig_all = 0.5 * (jnp.tanh(0.5 * gates) + 1.0)             # (Bp, 4H)
        i_g = sig_all[:, 0 * hidden:1 * hidden]
        f_g = sig_all[:, 1 * hidden:2 * hidden]
        o_g = sig_all[:, 3 * hidden:4 * hidden]
        g_g = jnp.tanh(gates[:, 2 * hidden:3 * hidden])
        c = f_g * c + i_g * g_g
        h = o_g * jnp.tanh(c)
        # Keep hidden state at the last valid step (t == lengths[b] - 1),
        # matching the index_select over adjusted_lengths.  Padded rows
        # (length 0) never match and stay zero.
        last = jnp.where(lens_v == (t + 1), h, last)

    # ---- log-softmax over the label dimension ----
    m = jnp.max(last, axis=1, keepdims=True)
    lse = jnp.log(jnp.sum(jnp.exp(last - m), axis=1, keepdims=True)) + m
    out_ref[...] = (last - lse).astype(out_ref.dtype)


def prepare_params(params):
    """One-time parameter prep (hoisted out of the per-call forward path)."""
    emb = params["embedding"].astype(jnp.float32)          # (V, E)
    w_ih = params["w_ih"].astype(jnp.float32)              # (4H, E)
    w_hh = params["w_hh"].astype(jnp.float32)              # (4H, H)
    bias = (params["b_ih"] + params["b_hh"]).astype(jnp.float32).reshape(1, -1)
    # Fused gather+projection table: onehot @ (emb @ W_ih^T) == x @ W_ih^T.
    table = jnp.dot(emb, jnp.transpose(w_ih),
                    precision=jax.lax.Precision.HIGHEST)   # (V, 4H)
    return {
        "table": table,                                    # (V, 4H)
        "whh_t": jnp.transpose(w_hh),                      # (H, 4H)
        "bias": bias,                                      # (1, 4H)
    }


@jax.jit
def classifier_forward(entity_ids, lengths, prep):
    """entity_ids: (B, S) int32, lengths: (B,) int32 -> (B, label_size) f32."""
    table = prep["table"]
    whh_t = prep["whh_t"]
    bias = prep["bias"]

    B, S = entity_ids.shape
    H = whh_t.shape[0]
    B_pad = ((B + 7) // 8) * 8          # pad batch to one sublane tile

    # Tiny data-dependent layout prep: pad batch, time-major flat ids so step
    # t's rows are ids[t*B_pad:(t+1)*B_pad].
    ids = entity_ids.astype(jnp.int32)
    ids_pad = jnp.pad(ids, ((0, B_pad - B), (0, 0)))              # (Bp, S)
    ids_tm = jnp.transpose(ids_pad).reshape(S * B_pad, 1)         # (S*Bp, 1)
    lens_pad = jnp.pad(lengths.astype(jnp.int32),
                       (0, B_pad - B)).reshape(B_pad, 1)          # (Bp, 1)

    kernel = functools.partial(lstm_classifier_kernel, seq_len=S, batch=B_pad)

    out = pl.pallas_call(
        kernel,
        out_shape=jax.ShapeDtypeStruct((B_pad, H), jnp.float32),
        in_specs=[pl.BlockSpec(memory_space=pltpu.MemorySpace.VMEM)
                  for _ in range(5)],
        out_specs=pl.BlockSpec(memory_space=pltpu.MemorySpace.VMEM),
    )(ids_tm, lens_pad, table, whh_t, bias)
    return out[:B]


def classifier_reference(entity_ids, lengths, params):
    """Pure-JAX reference (same math, no Pallas) for validation."""
    hp = jax.lax.Precision.HIGHEST
    emb = params["embedding"][entity_ids].astype(jnp.float32)   # (B, S, E)
    w_ih, w_hh = params["w_ih"], params["w_hh"]
    b = params["b_ih"] + params["b_hh"]
    B, S, _ = emb.shape
    H = w_hh.shape[1]
    h = jnp.zeros((B, H), jnp.float32)
    c = jnp.zeros((B, H), jnp.float32)
    last = jnp.zeros((B, H), jnp.float32)
    for t in range(S):
        g = (jnp.dot(emb[:, t, :], w_ih.T, precision=hp)
             + jnp.dot(h, w_hh.T, precision=hp) + b)
        i = jax.nn.sigmoid(g[:, 0:H])
        f = jax.nn.sigmoid(g[:, H:2 * H])
        gg = jnp.tanh(g[:, 2 * H:3 * H])
        o = jax.nn.sigmoid(g[:, 3 * H:4 * H])
        c = f * c + i * gg
        h = o * jnp.tanh(c)
        last = jnp.where((lengths == t + 1)[:, None], h, last)
    return jax.nn.log_softmax(last, axis=1)


def init_params(key, vocab_size, emb_dim, label_size):
    """Deterministic synthetic parameters (PyTorch-style uniform init)."""
    k_emb, k_wih, k_whh, k_bih, k_bhh = jax.random.split(key, 5)
    H = label_size
    bound = 1.0 / jnp.sqrt(jnp.float32(H))
    u = lambda k, shape: jax.random.uniform(k, shape, jnp.float32, -bound, bound)
    return {
        "embedding": jax.random.normal(k_emb, (vocab_size, emb_dim), jnp.float32),
        "w_ih": u(k_wih, (4 * H, emb_dim)),
        "w_hh": u(k_whh, (4 * H, H)),
        "b_ih": u(k_bih, (4 * H,)),
        "b_hh": u(k_bhh, (4 * H,)),
    }


if __name__ == "__main__":
    VOCAB = 50       # emb_weight.size(0)
    EMB = 32         # emb_weight.size(1)  == LSTM input_size
    LABELS = 16      # label_size          == LSTM hidden_size
    B, S = 4, 8      # batch, seq_len

    root = jax.random.PRNGKey(0)
    k_params, k_ids = jax.random.split(root)

    params = init_params(k_params, VOCAB, EMB, LABELS)
    prep = prepare_params(params)        # one-time; not on the per-call path

    entity_ids = jax.random.randint(k_ids, (B, S), 0, VOCAB, dtype=jnp.int32)
    # Lengths must be in [1, S] and max(lengths) == S (mirrors the module's
    # pack_padded_sequence + view() assumptions).
    lengths = jnp.array([8, 5, 3, 8], dtype=jnp.int32)
    assert int(lengths.min()) >= 1 and int(lengths.max()) == S

    logits = classifier_forward(entity_ids, lengths, prep)
    jax.block_until_ready(logits)

    assert logits.shape == (B, LABELS)
    assert bool(jnp.all(jnp.isfinite(logits)))
    # log-softmax rows must (approximately) sum to 1 in probability space.
    assert bool(jnp.all(jnp.abs(jnp.sum(jnp.exp(logits), axis=1) - 1.0) < 1e-4))
    # Match the pure-JAX reference implementation.
    ref = classifier_reference(entity_ids, lengths, params)
    assert bool(jnp.allclose(logits, ref, atol=1e-2, rtol=1e-2))

    print("KERNEL_OK")
</pallas_src>

<mosaic_0001>
module attributes {stable_mosaic.version = 11 : i64} {
  func.func @lstm_classifier_kernel(%arg0: memref<64x1xi32, #tpu.memory_space<vmem>>, %arg1: memref<8x1xi32, #tpu.memory_space<vmem>>, %arg2: memref<50x64xf32, #tpu.memory_space<vmem>>, %arg3: memref<16x64xf32, #tpu.memory_space<vmem>>, %arg4: memref<1x64xf32, #tpu.memory_space<vmem>>, %arg5: memref<8x16xf32, #tpu.memory_space<vmem>>) attributes {dimension_semantics = [], scalar_prefetch = 0 : i64, scratch_operands = 0 : i64, tpu.core_type = #tpu.core_type<tc>} {
    %c0 = arith.constant 0 : index
    %c0_0 = arith.constant 0 : index
    %0 = vector.load %arg0[%c0, %c0_0] : memref<64x1xi32, #tpu.memory_space<vmem>>, vector<64x1xi32>
    %1 = tpu.iota {dimensions = array<i32: 1>} : vector<64x50xi32>
    %2 = vector.broadcast %0 : vector<64x1xi32> to vector<64x50xi32>
    %3 = arith.cmpi eq, %2, %1 : vector<64x50xi32>
    %4 = arith.extui %3 : vector<64x50xi1> to vector<64x50xi32>
    %5 = arith.sitofp %4 : vector<64x50xi32> to vector<64x50xf32>
    %c0_1 = arith.constant 0 : index
    %c0_2 = arith.constant 0 : index
    %6 = vector.load %arg2[%c0_1, %c0_2] : memref<50x64xf32, #tpu.memory_space<vmem>>, vector<50x64xf32>
    %cst = arith.constant dense<0.000000e+00> : vector<64x64xf32>
    %7 = tpu.matmul %5, %6, %cst {dimension_numbers = #tpu.dot_dimension_numbers<[1], [0], [0], [1], [0, 0, 1, 1], [], []>} : vector<64x50xf32>, vector<50x64xf32>, vector<64x64xf32> -> vector<64x64xf32>
    %c0_3 = arith.constant 0 : index
    %c0_4 = arith.constant 0 : index
    %8 = vector.load %arg4[%c0_3, %c0_4] : memref<1x64xf32, #tpu.memory_space<vmem>>, vector<1x64xf32>
    %9 = vector.broadcast %8 : vector<1x64xf32> to vector<64x64xf32>
    %10 = arith.addf %7, %9 : vector<64x64xf32>
    %c0_5 = arith.constant 0 : index
    %c0_6 = arith.constant 0 : index
    %11 = vector.load %arg1[%c0_5, %c0_6] : memref<8x1xi32, #tpu.memory_space<vmem>>, vector<8x1xi32>
    %c0_7 = arith.constant 0 : index
    %c0_8 = arith.constant 0 : index
    %12 = vector.load %arg3[%c0_7, %c0_8] : memref<16x64xf32, #tpu.memory_space<vmem>>, vector<16x64xf32>
    %cst_9 = arith.constant 0.000000e+00 : f32
    %13 = vector.broadcast %cst_9 : f32 to vector<8x16xf32>
    %cst_10 = arith.constant 0.000000e+00 : f32
    %14 = vector.broadcast %cst_10 : f32 to vector<8x16xf32>
    %cst_11 = arith.constant 0.000000e+00 : f32
    %15 = vector.broadcast %cst_11 : f32 to vector<8x16xf32>
    %16 = vector.extract_strided_slice %10 {offsets = [0, 0], sizes = [8, 64], strides = [1, 1]} : vector<64x64xf32> to vector<8x64xf32>
    %cst_12 = arith.constant dense<0.000000e+00> : vector<8x64xf32>
    %17 = tpu.matmul %13, %12, %cst_12 {dimension_numbers = #tpu.dot_dimension_numbers<[1], [0], [0], [1], [0, 0, 1, 1], [], []>} : vector<8x16xf32>, vector<16x64xf32>, vector<8x64xf32> -> vector<8x64xf32>
    %18 = arith.addf %16, %17 : vector<8x64xf32>
    %cst_13 = arith.constant 5.000000e-01 : f32
    %19 = vector.broadcast %cst_13 : f32 to vector<8x64xf32>
    %20 = arith.mulf %19, %18 : vector<8x64xf32>
    %21 = math.tanh %20 : vector<8x64xf32>
    %cst_14 = arith.constant 1.000000e+00 : f32
    %22 = vector.broadcast %cst_14 : f32 to vector<8x64xf32>
    %23 = arith.addf %21, %22 : vector<8x64xf32>
    %cst_15 = arith.constant 5.000000e-01 : f32
    %24 = vector.broadcast %cst_15 : f32 to vector<8x64xf32>
    %25 = arith.mulf %24, %23 : vector<8x64xf32>
    %26 = vector.extract_strided_slice %25 {offsets = [0, 0], sizes = [8, 16], strides = [1, 1]} : vector<8x64xf32> to vector<8x16xf32>
    %27 = vector.extract_strided_slice %25 {offsets = [0, 16], sizes = [8, 16], strides = [1, 1]} : vector<8x64xf32> to vector<8x16xf32>
    %28 = vector.extract_strided_slice %25 {offsets = [0, 48], sizes = [8, 16], strides = [1, 1]} : vector<8x64xf32> to vector<8x16xf32>
    %29 = vector.extract_strided_slice %18 {offsets = [0, 32], sizes = [8, 16], strides = [1, 1]} : vector<8x64xf32> to vector<8x16xf32>
    %30 = math.tanh %29 : vector<8x16xf32>
    %31 = arith.mulf %27, %14 : vector<8x16xf32>
    %32 = arith.mulf %26, %30 : vector<8x16xf32>
    %33 = arith.addf %31, %32 : vector<8x16xf32>
    %34 = math.tanh %33 : vector<8x16xf32>
    %35 = arith.mulf %28, %34 : vector<8x16xf32>
    %c1_i32 = arith.constant 1 : i32
    %36 = vector.broadcast %c1_i32 : i32 to vector<8x1xi32>
    %37 = arith.cmpi eq, %11, %36 : vector<8x1xi32>
    %38 = vector.shape_cast %37 : vector<8x1xi1> to vector<8x1xi1>
    %39 = vector.broadcast %38 : vector<8x1xi1> to vector<8x16xi1>
    %40 = arith.select %39, %35, %15 : vector<8x16xi1>, vector<8x16xf32>
    %41 = vector.extract_strided_slice %10 {offsets = [8, 0], sizes = [8, 64], strides = [1, 1]} : vector<64x64xf32> to vector<8x64xf32>
    %cst_16 = arith.constant dense<0.000000e+00> : vector<8x64xf32>
    %42 = tpu.matmul %35, %12, %cst_16 {dimension_numbers = #tpu.dot_dimension_numbers<[1], [0], [0], [1], [0, 0, 1, 1], [], []>} : vector<8x16xf32>, vector<16x64xf32>, vector<8x64xf32> -> vector<8x64xf32>
    %43 = arith.addf %41, %42 : vector<8x64xf32>
    %cst_17 = arith.constant 5.000000e-01 : f32
    %44 = vector.broadcast %cst_17 : f32 to vector<8x64xf32>
    %45 = arith.mulf %44, %43 : vector<8x64xf32>
    %46 = math.tanh %45 : vector<8x64xf32>
    %cst_18 = arith.constant 1.000000e+00 : f32
    %47 = vector.broadcast %cst_18 : f32 to vector<8x64xf32>
    %48 = arith.addf %46, %47 : vector<8x64xf32>
    %cst_19 = arith.constant 5.000000e-01 : f32
    %49 = vector.broadcast %cst_19 : f32 to vector<8x64xf32>
    %50 = arith.mulf %49, %48 : vector<8x64xf32>
    %51 = vector.extract_strided_slice %50 {offsets = [0, 0], sizes = [8, 16], strides = [1, 1]} : vector<8x64xf32> to vector<8x16xf32>
    %52 = vector.extract_strided_slice %50 {offsets = [0, 16], sizes = [8, 16], strides = [1, 1]} : vector<8x64xf32> to vector<8x16xf32>
    %53 = vector.extract_strided_slice %50 {offsets = [0, 48], sizes = [8, 16], strides = [1, 1]} : vector<8x64xf32> to vector<8x16xf32>
    %54 = vector.extract_strided_slice %43 {offsets = [0, 32], sizes = [8, 16], strides = [1, 1]} : vector<8x64xf32> to vector<8x16xf32>
    %55 = math.tanh %54 : vector<8x16xf32>
    %56 = arith.mulf %52, %33 : vector<8x16xf32>
    %57 = arith.mulf %51, %55 : vector<8x16xf32>
    %58 = arith.addf %56, %57 : vector<8x16xf32>
    %59 = math.tanh %58 : vector<8x16xf32>
    %60 = arith.mulf %53, %59 : vector<8x16xf32>
    %c2_i32 = arith.constant 2 : i32
    %61 = vector.broadcast %c2_i32 : i32 to vector<8x1xi32>
    %62 = arith.cmpi eq, %11, %61 : vector<8x1xi32>
    %63 = vector.shape_cast %62 : vector<8x1xi1> to vector<8x1xi1>
    %64 = vector.broadcast %63 : vector<8x1xi1> to vector<8x16xi1>
    %65 = arith.select %64, %60, %40 : vector<8x16xi1>, vector<8x16xf32>
    %66 = vector.extract_strided_slice %10 {offsets = [16, 0], sizes = [8, 64], strides = [1, 1]} : vector<64x64xf32> to vector<8x64xf32>
    %cst_20 = arith.constant dense<0.000000e+00> : vector<8x64xf32>
    %67 = tpu.matmul %60, %12, %cst_20 {dimension_numbers = #tpu.dot_dimension_numbers<[1], [0], [0], [1], [0, 0, 1, 1], [], []>} : vector<8x16xf32>, vector<16x64xf32>, vector<8x64xf32> -> vector<8x64xf32>
    %68 = arith.addf %66, %67 : vector<8x64xf32>
    %cst_21 = arith.constant 5.000000e-01 : f32
    %69 = vector.broadcast %cst_21 : f32 to vector<8x64xf32>
    %70 = arith.mulf %69, %68 : vector<8x64xf32>
    %71 = math.tanh %70 : vector<8x64xf32>
    %cst_22 = arith.constant 1.000000e+00 : f32
    %72 = vector.broadcast %cst_22 : f32 to vector<8x64xf32>
    %73 = arith.addf %71, %72 : vector<8x64xf32>
    %cst_23 = arith.constant 5.000000e-01 : f32
    %74 = vector.broadcast %cst_23 : f32 to vector<8x64xf32>
    %75 = arith.mulf %74, %73 : vector<8x64xf32>
    %76 = vector.extract_strided_slice %75 {offsets = [0, 0], sizes = [8, 16], strides = [1, 1]} : vector<8x64xf32> to vector<8x16xf32>
    %77 = vector.extract_strided_slice %75 {offsets = [0, 16], sizes = [8, 16], strides = [1, 1]} : vector<8x64xf32> to vector<8x16xf32>
    %78 = vector.extract_strided_slice %75 {offsets = [0, 48], sizes = [8, 16], strides = [1, 1]} : vector<8x64xf32> to vector<8x16xf32>
    %79 = vector.extract_strided_slice %68 {offsets = [0, 32], sizes = [8, 16], strides = [1, 1]} : vector<8x64xf32> to vector<8x16xf32>
    %80 = math.tanh %79 : vector<8x16xf32>
    %81 = arith.mulf %77, %58 : vector<8x16xf32>
    %82 = arith.mulf %76, %80 : vector<8x16xf32>
    %83 = arith.addf %81, %82 : vector<8x16xf32>
    %84 = math.tanh %83 : vector<8x16xf32>
    %85 = arith.mulf %78, %84 : vector<8x16xf32>
    %c3_i32 = arith.constant 3 : i32
    %86 = vector.broadcast %c3_i32 : i32 to vector<8x1xi32>
    %87 = arith.cmpi eq, %11, %86 : vector<8x1xi32>
    %88 = vector.shape_cast %87 : vector<8x1xi1> to vector<8x1xi1>
    %89 = vector.broadcast %88 : vector<8x1xi1> to vector<8x16xi1>
    %90 = arith.select %89, %85, %65 : vector<8x16xi1>, vector<8x16xf32>
    %91 = vector.extract_strided_slice %10 {offsets = [24, 0], sizes = [8, 64], strides = [1, 1]} : vector<64x64xf32> to vector<8x64xf32>
    %cst_24 = arith.constant dense<0.000000e+00> : vector<8x64xf32>
    %92 = tpu.matmul %85, %12, %cst_24 {dimension_numbers = #tpu.dot_dimension_numbers<[1], [0], [0], [1], [0, 0, 1, 1], [], []>} : vector<8x16xf32>, vector<16x64xf32>, vector<8x64xf32> -> vector<8x64xf32>
    %93 = arith.addf %91, %92 : vector<8x64xf32>
    %cst_25 = arith.constant 5.000000e-01 : f32
    %94 = vector.broadcast %cst_25 : f32 to vector<8x64xf32>
    %95 = arith.mulf %94, %93 : vector<8x64xf32>
    %96 = math.tanh %95 : vector<8x64xf32>
    %cst_26 = arith.constant 1.000000e+00 : f32
    %97 = vector.broadcast %cst_26 : f32 to vector<8x64xf32>
    %98 = arith.addf %96, %97 : vector<8x64xf32>
    %cst_27 = arith.constant 5.000000e-01 : f32
    %99 = vector.broadcast %cst_27 : f32 to vector<8x64xf32>
    %100 = arith.mulf %99, %98 : vector<8x64xf32>
    %101 = vector.extract_strided_slice %100 {offsets = [0, 0], sizes = [8, 16], strides = [1, 1]} : vector<8x64xf32> to vector<8x16xf32>
    %102 = vector.extract_strided_slice %100 {offsets = [0, 16], sizes = [8, 16], strides = [1, 1]} : vector<8x64xf32> to vector<8x16xf32>
    %103 = vector.extract_strided_slice %100 {offsets = [0, 48], sizes = [8, 16], strides = [1, 1]} : vector<8x64xf32> to vector<8x16xf32>
    %104 = vector.extract_strided_slice %93 {offsets = [0, 32], sizes = [8, 16], strides = [1, 1]} : vector<8x64xf32> to vector<8x16xf32>
    %105 = math.tanh %104 : vector<8x16xf32>
    %106 = arith.mulf %102, %83 : vector<8x16xf32>
    %107 = arith.mulf %101, %105 : vector<8x16xf32>
    %108 = arith.addf %106, %107 : vector<8x16xf32>
    %109 = math.tanh %108 : vector<8x16xf32>
    %110 = arith.mulf %103, %109 : vector<8x16xf32>
    %c4_i32 = arith.constant 4 : i32
    %111 = vector.broadcast %c4_i32 : i32 to vector<8x1xi32>
    %112 = arith.cmpi eq, %11, %111 : vector<8x1xi32>
    %113 = vector.shape_cast %112 : vector<8x1xi1> to vector<8x1xi1>
    %114 = vector.broadcast %113 : vector<8x1xi1> to vector<8x16xi1>
    %115 = arith.select %114, %110, %90 : vector<8x16xi1>, vector<8x16xf32>
    %116 = vector.extract_strided_slice %10 {offsets = [32, 0], sizes = [8, 64], strides = [1, 1]} : vector<64x64xf32> to vector<8x64xf32>
    %cst_28 = arith.constant dense<0.000000e+00> : vector<8x64xf32>
    %117 = tpu.matmul %110, %12, %cst_28 {dimension_numbers = #tpu.dot_dimension_numbers<[1], [0], [0], [1], [0, 0, 1, 1], [], []>} : vector<8x16xf32>, vector<16x64xf32>, vector<8x64xf32> -> vector<8x64xf32>
    %118 = arith.addf %116, %117 : vector<8x64xf32>
    %cst_29 = arith.constant 5.000000e-01 : f32
    %119 = vector.broadcast %cst_29 : f32 to vector<8x64xf32>
    %120 = arith.mulf %119, %118 : vector<8x64xf32>
    %121 = math.tanh %120 : vector<8x64xf32>
    %cst_30 = arith.constant 1.000000e+00 : f32
    %122 = vector.broadcast %cst_30 : f32 to vector<8x64xf32>
    %123 = arith.addf %121, %122 : vector<8x64xf32>
    %cst_31 = arith.constant 5.000000e-01 : f32
    %124 = vector.broadcast %cst_31 : f32 to vector<8x64xf32>
    %125 = arith.mulf %124, %123 : vector<8x64xf32>
    %126 = vector.extract_strided_slice %125 {offsets = [0, 0], sizes = [8, 16], strides = [1, 1]} : vector<8x64xf32> to vector<8x16xf32>
    %127 = vector.extract_strided_slice %125 {offsets = [0, 16], sizes = [8, 16], strides = [1, 1]} : vector<8x64xf32> to vector<8x16xf32>
    %128 = vector.extract_strided_slice %125 {offsets = [0, 48], sizes = [8, 16], strides = [1, 1]} : vector<8x64xf32> to vector<8x16xf32>
    %129 = vector.extract_strided_slice %118 {offsets = [0, 32], sizes = [8, 16], strides = [1, 1]} : vector<8x64xf32> to vector<8x16xf32>
    %130 = math.tanh %129 : vector<8x16xf32>
    %131 = arith.mulf %127, %108 : vector<8x16xf32>
    %132 = arith.mulf %126, %130 : vector<8x16xf32>
    %133 = arith.addf %131, %132 : vector<8x16xf32>
    %134 = math.tanh %133 : vector<8x16xf32>
    %135 = arith.mulf %128, %134 : vector<8x16xf32>
    %c5_i32 = arith.constant 5 : i32
    %136 = vector.broadcast %c5_i32 : i32 to vector<8x1xi32>
    %137 = arith.cmpi eq, %11, %136 : vector<8x1xi32>
    %138 = vector.shape_cast %137 : vector<8x1xi1> to vector<8x1xi1>
    %139 = vector.broadcast %138 : vector<8x1xi1> to vector<8x16xi1>
    %140 = arith.select %139, %135, %115 : vector<8x16xi1>, vector<8x16xf32>
    %141 = vector.extract_strided_slice %10 {offsets = [40, 0], sizes = [8, 64], strides = [1, 1]} : vector<64x64xf32> to vector<8x64xf32>
    %cst_32 = arith.constant dense<0.000000e+00> : vector<8x64xf32>
    %142 = tpu.matmul %135, %12, %cst_32 {dimension_numbers = #tpu.dot_dimension_numbers<[1], [0], [0], [1], [0, 0, 1, 1], [], []>} : vector<8x16xf32>, vector<16x64xf32>, vector<8x64xf32> -> vector<8x64xf32>
    %143 = arith.addf %141, %142 : vector<8x64xf32>
    %cst_33 = arith.constant 5.000000e-01 : f32
    %144 = vector.broadcast %cst_33 : f32 to vector<8x64xf32>
    %145 = arith.mulf %144, %143 : vector<8x64xf32>
    %146 = math.tanh %145 : vector<8x64xf32>
    %cst_34 = arith.constant 1.000000e+00 : f32
    %147 = vector.broadcast %cst_34 : f32 to vector<8x64xf32>
    %148 = arith.addf %146, %147 : vector<8x64xf32>
    %cst_35 = arith.constant 5.000000e-01 : f32
    %149 = vector.broadcast %cst_35 : f32 to vector<8x64xf32>
    %150 = arith.mulf %149, %148 : vector<8x64xf32>
    %151 = vector.extract_strided_slice %150 {offsets = [0, 0], sizes = [8, 16], strides = [1, 1]} : vector<8x64xf32> to vector<8x16xf32>
    %152 = vector.extract_strided_slice %150 {offsets = [0, 16], sizes = [8, 16], strides = [1, 1]} : vector<8x64xf32> to vector<8x16xf32>
    %153 = vector.extract_strided_slice %150 {offsets = [0, 48], sizes = [8, 16], strides = [1, 1]} : vector<8x64xf32> to vector<8x16xf32>
    %154 = vector.extract_strided_slice %143 {offsets = [0, 32], sizes = [8, 16], strides = [1, 1]} : vector<8x64xf32> to vector<8x16xf32>
    %155 = math.tanh %154 : vector<8x16xf32>
    %156 = arith.mulf %152, %133 : vector<8x16xf32>
    %157 = arith.mulf %151, %155 : vector<8x16xf32>
    %158 = arith.addf %156, %157 : vector<8x16xf32>
    %159 = math.tanh %158 : vector<8x16xf32>
    %160 = arith.mulf %153, %159 : vector<8x16xf32>
    %c6_i32 = arith.constant 6 : i32
    %161 = vector.broadcast %c6_i32 : i32 to vector<8x1xi32>
    %162 = arith.cmpi eq, %11, %161 : vector<8x1xi32>
    %163 = vector.shape_cast %162 : vector<8x1xi1> to vector<8x1xi1>
    %164 = vector.broadcast %163 : vector<8x1xi1> to vector<8x16xi1>
    %165 = arith.select %164, %160, %140 : vector<8x16xi1>, vector<8x16xf32>
    %166 = vector.extract_strided_slice %10 {offsets = [48, 0], sizes = [8, 64], strides = [1, 1]} : vector<64x64xf32> to vector<8x64xf32>
    %cst_36 = arith.constant dense<0.000000e+00> : vector<8x64xf32>
    %167 = tpu.matmul %160, %12, %cst_36 {dimension_numbers = #tpu.dot_dimension_numbers<[1], [0], [0], [1], [0, 0, 1, 1], [], []>} : vector<8x16xf32>, vector<16x64xf32>, vector<8x64xf32> -> vector<8x64xf32>
    %168 = arith.addf %166, %167 : vector<8x64xf32>
    %cst_37 = arith.constant 5.000000e-01 : f32
    %169 = vector.broadcast %cst_37 : f32 to vector<8x64xf32>
    %170 = arith.mulf %169, %168 : vector<8x64xf32>
    %171 = math.tanh %170 : vector<8x64xf32>
    %cst_38 = arith.constant 1.000000e+00 : f32
    %172 = vector.broadcast %cst_38 : f32 to vector<8x64xf32>
    %173 = arith.addf %171, %172 : vector<8x64xf32>
    %cst_39 = arith.constant 5.000000e-01 : f32
    %174 = vector.broadcast %cst_39 : f32 to vector<8x64xf32>
    %175 = arith.mulf %174, %173 : vector<8x64xf32>
    %176 = vector.extract_strided_slice %175 {offsets = [0, 0], sizes = [8, 16], strides = [1, 1]} : vector<8x64xf32> to vector<8x16xf32>
    %177 = vector.extract_strided_slice %175 {offsets = [0, 16], sizes = [8, 16], strides = [1, 1]} : vector<8x64xf32> to vector<8x16xf32>
    %178 = vector.extract_strided_slice %175 {offsets = [0, 48], sizes = [8, 16], strides = [1, 1]} : vector<8x64xf32> to vector<8x16xf32>
    %179 = vector.extract_strided_slice %168 {offsets = [0, 32], sizes = [8, 16], strides = [1, 1]} : vector<8x64xf32> to vector<8x16xf32>
    %180 = math.tanh %179 : vector<8x16xf32>
    %181 = arith.mulf %177, %158 : vector<8x16xf32>
    %182 = arith.mulf %176, %180 : vector<8x16xf32>
    %183 = arith.addf %181, %182 : vector<8x16xf32>
    %184 = math.tanh %183 : vector<8x16xf32>
    %185 = arith.mulf %178, %184 : vector<8x16xf32>
    %c7_i32 = arith.constant 7 : i32
    %186 = vector.broadcast %c7_i32 : i32 to vector<8x1xi32>
    %187 = arith.cmpi eq, %11, %186 : vector<8x1xi32>
    %188 = vector.shape_cast %187 : vector<8x1xi1> to vector<8x1xi1>
    %189 = vector.broadcast %188 : vector<8x1xi1> to vector<8x16xi1>
    %190 = arith.select %189, %185, %165 : vector<8x16xi1>, vector<8x16xf32>
    %191 = vector.extract_strided_slice %10 {offsets = [56, 0], sizes = [8, 64], strides = [1, 1]} : vector<64x64xf32> to vector<8x64xf32>
    %cst_40 = arith.constant dense<0.000000e+00> : vector<8x64xf32>
    %192 = tpu.matmul %185, %12, %cst_40 {dimension_numbers = #tpu.dot_dimension_numbers<[1], [0], [0], [1], [0, 0, 1, 1], [], []>} : vector<8x16xf32>, vector<16x64xf32>, vector<8x64xf32> -> vector<8x64xf32>
    %193 = arith.addf %191, %192 : vector<8x64xf32>
    %cst_41 = arith.constant 5.000000e-01 : f32
    %194 = vector.broadcast %cst_41 : f32 to vector<8x64xf32>
    %195 = arith.mulf %194, %193 : vector<8x64xf32>
    %196 = math.tanh %195 : vector<8x64xf32>
    %cst_42 = arith.constant 1.000000e+00 : f32
    %197 = vector.broadcast %cst_42 : f32 to vector<8x64xf32>
    %198 = arith.addf %196, %197 : vector<8x64xf32>
    %cst_43 = arith.constant 5.000000e-01 : f32
    %199 = vector.broadcast %cst_43 : f32 to vector<8x64xf32>
    %200 = arith.mulf %199, %198 : vector<8x64xf32>
    %201 = vector.extract_strided_slice %200 {offsets = [0, 0], sizes = [8, 16], strides = [1, 1]} : vector<8x64xf32> to vector<8x16xf32>
    %202 = vector.extract_strided_slice %200 {offsets = [0, 16], sizes = [8, 16], strides = [1, 1]} : vector<8x64xf32> to vector<8x16xf32>
    %203 = vector.extract_strided_slice %200 {offsets = [0, 48], sizes = [8, 16], strides = [1, 1]} : vector<8x64xf32> to vector<8x16xf32>
    %204 = vector.extract_strided_slice %193 {offsets = [0, 32], sizes = [8, 16], strides = [1, 1]} : vector<8x64xf32> to vector<8x16xf32>
    %205 = math.tanh %204 : vector<8x16xf32>
    %206 = arith.mulf %202, %183 : vector<8x16xf32>
    %207 = arith.mulf %201, %205 : vector<8x16xf32>
    %208 = arith.addf %206, %207 : vector<8x16xf32>
    %209 = math.tanh %208 : vector<8x16xf32>
    %210 = arith.mulf %203, %209 : vector<8x16xf32>
    %c8_i32 = arith.constant 8 : i32
    %211 = vector.broadcast %c8_i32 : i32 to vector<8x1xi32>
    %212 = arith.cmpi eq, %11, %211 : vector<8x1xi32>
    %213 = vector.shape_cast %212 : vector<8x1xi1> to vector<8x1xi1>
    %214 = vector.broadcast %213 : vector<8x1xi1> to vector<8x16xi1>
    %215 = arith.select %214, %210, %190 : vector<8x16xi1>, vector<8x16xf32>
    %cst_44 = arith.constant dense<0xFF800000> : vector<8xf32>
    %216 = vector.multi_reduction <maximumf>, %215, %cst_44 [1] : vector<8x16xf32> to vector<8xf32>
    %217 = vector.shape_cast %216 : vector<8xf32> to vector<8x1xf32>
    %218 = vector.broadcast %217 : vector<8x1xf32> to vector<8x16xf32>
    %219 = arith.subf %215, %218 : vector<8x16xf32>
    %220 = math.exp %219 : vector<8x16xf32>
    %cst_45 = arith.constant dense<0.000000e+00> : vector<8xf32>
    %221 = vector.multi_reduction <add>, %220, %cst_45 [1] : vector<8x16xf32> to vector<8xf32>
    %222 = vector.shape_cast %221 : vector<8xf32> to vector<8x1xf32>
    %223 = math.log %222 : vector<8x1xf32>
    %224 = arith.addf %223, %217 : vector<8x1xf32>
    %225 = vector.broadcast %224 : vector<8x1xf32> to vector<8x16xf32>
    %226 = arith.subf %215, %225 : vector<8x16xf32>
    %c0_46 = arith.constant 0 : index
    %c0_47 = arith.constant 0 : index
    %227 = vector.load %arg5[%c0_46, %c0_47] : memref<8x16xf32, #tpu.memory_space<vmem>>, vector<8x16xf32>
    tpu.vector_store %arg5[%c0_46, %c0_47], %226 {strides = array<i32>} : memref<8x16xf32, #tpu.memory_space<vmem>>, vector<8x16xf32>,
    return
  }
}

</mosaic_0001>

<bundles_post_ra>
// kernel: classifier_forward.1
= control target key start
LH: loop header
LB: loop body
LE: loop exit
PB: predicated region body
PF: predicated region fallthrough
CT: control target
= control target key end

     0   :  { %vm114_vm0 = vcmask 1041408   ;;  %v735_v0 = vmov 0   ;;  %v28_v12 = vlaneseq  ;;  %vm89_vm1 = vcmask 408576   ;;  %s737_s15 = smov 96   ;;  %s738_s16 = smov 16   ;;  %s985_s0 = inlined_call_operand.vmem [shape: s32[64,1], index: 0, kind: input, shape index: {}]   ;;  %s986_s2 = inlined_call_operand.vmem [shape: f32[50,64], index: 2, kind: input, shape index: {}]   ;;  %s987_s4 = inlined_call_operand.vmem [shape: f32[1,64], index: 4, kind: input, shape index: {}]   ;;  %s988_s3 = inlined_call_operand.vmem [shape: f32[16,64], index: 3, kind: input, shape index: {}]   ;;  %s989_s1 = inlined_call_operand.vmem [shape: s32[8,1], index: 1, kind: input, shape index: {}]   ;;  %s990_s5 = inlined_call_operand.vmem [shape: f32[8,16], index: 5, kind: output, shape index: {}]  }
   0x1   :  { %679 = vset.pattern.permute.xlu0 %v735_v0  ;;  %v24_v1 = vld [vmem:[%s985_s0 + $0x20] sm:$0xff]  ;;  %v84_v2 = vld [vmem:[%s986_s2 + $0x30] sm:$0x3]  ;;  %681 = vset.pattern.permute.xlu1 %v735_v0  ;;  %v83_v3 = vld [vmem:[%s986_s2 + $0x28] sm:$0xff]  ;;  %v736_v15 = vmov 0.0   ;;  %s740_s21 = smov 80  }
   0x2   :  { %43 = vperm.xlu0 %679, %v24_v1   ;;  %652 = vmatpush.msk.msra.mxu1 %vm114_vm0, %v84_v2  ;;  %v82_v4 = vld [vmem:[%s986_s2 + $0x20] sm:$0xff]  ;;  %v81_v5 = vld [vmem:[%s986_s2 + $0x18] sm:$0xff]  ;;  %v80_v7 = vld [vmem:[%s986_s2 + $0x10] sm:$0xff]  ;;  %v821_v13 = vand.u32 127, %v28_v12  ;;  %vm162_vm6 = vcmask 130048  }
   0x3   :  { %636 = vmatpush.msk.msra.mxu0 %vm114_vm0, %v84_v2  ;;  %680 = vset.pattern.permute.xlu2 %v735_v0  ;;  %v20_v6 = vld [vmem:[%s985_s0] sm:$0xff]  ;;  %v79_v8 = vld [vmem:[%s986_s2 + $0x8] sm:$0xff]  ;;  %v26_v51 = vld [vmem:[%s985_s0 + $0x30] sm:$0xff] }
   0x4   :  { %655 = vmatpush.msra.mxu1 %v83_v3  ;;  %653 = vmatpush.msk.msra.mxu2 %vm114_vm0, %v84_v2  ;;  %v78_v9 = vld [vmem:[%s986_s2] sm:$0xff]  ;;  %v808_v10 = vld [vmem:[%s988_s3 + $0x8] sm:$0xff]  ;;  %v22_v52 = vld [vmem:[%s985_s0 + $0x10] sm:$0xff] }
   0x5   :  { %128 = vmatpush.msra.mxu0 %v83_v3  ;;  %654 = vmatpush.msk.msra.mxu3 %vm114_vm0, %v84_v2  ;;  %v816_v11 = vld [vmem:[%s988_s3] sm:$0xff]  ;;  %v21_v36 = vld [vmem:[%s985_s0 + $0x8] sm:$0xff]  ;;  %v27_v60 = vld [vmem:[%s985_s0 + $0x38] sm:$0xff] }
   0x6   :  { %658 = vmatpush.msra.mxu1 %v82_v4  ;;  %656 = vmatpush.msra.mxu2 %v83_v3  ;;  %v839_v20 = vld [vmem:[%s987_s4] ss:$0 sm:$0xff]  ;;  %s739_s4 = smov 32   ;;  %v25_v37 = vld [vmem:[%s985_s0 + $0x28] sm:$0xff] }
   0x7   :  { %129 = vmatpush.msra.mxu0 %v82_v4  ;;  %657 = vmatpush.msra.mxu3 %v83_v3 }
   0x8   :  { %661 = vmatpush.msra.mxu1 %v81_v5  ;;  %659 = vmatpush.msra.mxu2 %v82_v4 }
   0x9   :  { %130 = vmatpush.msra.mxu0 %v81_v5  ;;  %660 = vmatpush.msra.mxu3 %v82_v4 }
   0xa   :  { %31 = vperm.xlu0 %679, %v20_v6   ;;  %664 = vmatpush.msra.mxu1 %v80_v7 }
   0xb   :  { %131 = vmatpush.msra.mxu0 %v80_v7  ;;  %662 = vmatpush.msra.mxu2 %v81_v5 }
   0xc   :  { %667 = vmatpush.msra.mxu1 %v79_v8  ;;  %663 = vmatpush.msra.mxu3 %v81_v5 }
   0xd   :  { %132 = vmatpush.msra.mxu0 %v79_v8  ;;  %665 = vmatpush.msra.mxu2 %v80_v7 }
   0xe   :  { %666 = vmatpush.msra.mxu3 %v80_v7  ;;  %670 = vmatpush.msra.mxu1 %v78_v9 }
   0xf   :  { %668 = vmatpush.msra.mxu2 %v79_v8  ;;  %133 = vmatpush.msra.mxu0 %v78_v9 }
  0x10   :  { %669 = vmatpush.msra.mxu3 %v79_v8  ;;  %180 = vmatpush.msrb.mxu1 %v808_v10 }
  0x11   :  { %671 = vmatpush.msra.mxu2 %v78_v9 }
  0x12   :  { %672 = vmatpush.msra.mxu3 %v78_v9  ;;  %181 = vmatpush.msrb.mxu1 %v816_v11 }
  0x13   :  { %235 = vmatpush.msrb.mxu2 %v808_v10 }
  0x14   :  { %290 = vmatpush.msrb.mxu3 %v808_v10 }
  0x15   :  { %236 = vmatpush.msrb.mxu2 %v816_v11 }
  0x16   :  { %291 = vmatpush.msrb.mxu3 %v816_v11 }
  0x74   :  { %v44_v14 = vpop.permute.xlu0 %43 }
  0x75   :  { %vm58_vm2 = vcmp.eq.s32.totalorder %v44_v14, %v821_v13 }
  0x76   :  { %v632_v16 = vsel %vm58_vm2, 1.0, %v736_v15 }
  0x77   :  { %641 = vmatmul.msk.f32.vlgmr.msra.gmra.mxu1 %vm89_vm1, %v632_v16 }
  0x78   :  { %345 = vmatpush.msra.mxu1 %v808_v10 }
  0x7a   :  { %346 = vmatpush.msra.mxu1 %v816_v11 }
  0x7c   :  { %v32_v17 = vpop.permute.xlu0 %31 }
  0x7d   :  { %vm54_vm3 = vcmp.eq.s32.totalorder %v32_v17, %v821_v13 }
  0x7e   :  { %v628_v18 = vsel %vm54_vm3, 1.0, %v736_v15 }
  0x7f   :  { %637 = vmatmul.msk.f32.vlgmr.msra.gmra.mxu0 %vm89_vm1, %v628_v18  ;;  %182 = vmatmul.f32.vlgmr.msrb.gmra.mxu1 %v736_v15 }
  0x80   :  { %510 = vmatpush.msrb.mxu1 %v808_v10 }
  0x82   :  { %511 = vmatpush.msrb.mxu1 %v816_v11 }
  0xf4   :  { %v834_v19 = vpop.f32.mrf.mxu1 }
  0xfc   :  { %v135_v21 = vpop.f32.mrf.mxu0  ;;  %v183_v22 = vpop.f32.mrf.mxu1 }
  0xfd   :  { %v136_v23 = vadd.f32 %v839_v20, %v135_v21  ;;  %v23_v21 = vld [vmem:[%s985_s0 + $0x18] sm:$0xff] }
  0xff   :  { %v186_v24 = vadd.f32 %v183_v22, %v136_v23 }
 0x101   :  { %683 = vtanh.f32 %v186_v24  ;;  %v187_v26 = vmul.f32 0.5, %v186_v24 }
 0x103   :  { %685 = vtanh.f32 %v187_v26 }
 0x107   :  { %v684_v25 = vpop.eup %683 }
 0x108   :  { %194 = vrot.lane.b32.xlu1 %v684_v25, %s737_s15 }
 0x109   :  { %v686_v27 = vpop.eup %685 }
 0x10a   :  { %v189_v28 = vadd.f32 1.0, %v686_v27 }
 0x10c   :  { %v190_v29 = vmul.f32 0.5, %v189_v28 }
 0x10e   :  { %v192_v32 = vmul.f32 0.0, %v190_v29 }
 0x17a   :  { %v195_v30 = vpop.permute.xlu1 %194 }
 0x17b   :  { %v197_v31 = vmul.f32 %v195_v30, %v190_v29 }
 0x17d   :  { %199 = vrot.lane.b32.xlu1 %v197_v31, %s738_s16 }
 0x185   :  { %34 = vperm.xlu1 %681, %v21_v36  }
 0x1ef   :  { %v200_v33 = vpop.permute.xlu1 %199 }
 0x1f0   :  { %v202_v34 = vadd.f32 %v200_v33, %v192_v32 }
 0x1f2   :  { %687 = vtanh.f32 %v202_v34 }
 0x1f7   :  { %v35_v42 = vpop.permute.xlu1 %34 }
 0x1f8   :  { %v688_v35 = vpop.eup %687  ;;  %vm55_vm5 = vcmp.eq.s32.totalorder %v35_v42, %v821_v13 }
 0x1f9   :  { %205 = vrot.lane.b32.xlu2 %v688_v35, %s739_s4  ;;  %v629_v43 = vsel %vm55_vm5, 1.0, %v736_v15 }
 0x1fa   :  { %638 = vmatmul.msk.f32.gmra.mxu0 %vm89_vm1, %v629_v43 }
 0x201   :  { %46 = vperm.xlu2 %680, %v25_v37  }
 0x253   :  { %v206_v38 = vpop.permute.xlu2 %205 }
 0x254   :  { %v851_v39 = vmul.f32 %v206_v38, %v190_v29 }
 0x256   :  { %217 = vrot.lane.b32.xlu0 %v851_v39, %s740_s21 }
 0x25b   :  { %v47_v40 = vpop.permute.xlu2 %46 }
 0x25c   :  { %vm59_vm4 = vcmp.eq.s32.totalorder %v47_v40, %v821_v13 }
 0x25d   :  { %v633_v41 = vsel %vm59_vm4, 1.0, %v736_v15 }
 0x25e   :  { %642 = vmatmul.msk.f32.vlgmr.msra.gmra.mxu2 %vm89_vm1, %v633_v41 }
 0x25f   :  { %400 = vmatpush.msra.mxu2 %v808_v10 }
 0x261   :  { %401 = vmatpush.msra.mxu2 %v816_v11 }
 0x277   :  { %v138_v46 = vpop.f32.mrf.mxu0 }
 0x278   :  { %v139_v47 = vadd.f32 %v839_v20, %v138_v46 }
 0x2c8   :  { %v218_v44 = vpop.permute.xlu0 %217 }
 0x2c9   :  { %645 = vmatmul.msk.f32.vlgmr.msrb.gmra.mxu2 %vm162_vm6, %v218_v44 }
 0x2ca   :  { %565 = vmatpush.msrb.mxu2 %v808_v10 }
 0x2cc   :  { %566 = vmatpush.msrb.mxu2 %v816_v11 }
 0x2e1   :  { %v866_v45 = vpop.f32.mrf.mxu2 }
 0x34c   :  { %v238_v48 = vpop.f32.mrf.mxu2 }
 0x34d   :  { %v241_v49 = vadd.f32 %v238_v48, %v139_v47 }
 0x34f   :  { %689 = vtanh.f32 %v241_v49  ;;  %v242_v53 = vmul.f32 0.5, %v241_v49 }
 0x351   :  { %691 = vtanh.f32 %v242_v53 }
 0x355   :  { %v690_v50 = vpop.eup %689 }
 0x356   :  { %249 = vrot.lane.b32.xlu2 %v690_v50, %s737_s15 }
 0x357   :  { %v692_v54 = vpop.eup %691 }
 0x358   :  { %v244_v55 = vadd.f32 1.0, %v692_v54 }
 0x35a   :  { %v245_v56 = vmul.f32 0.5, %v244_v55  ;;  %v148_v55 = vadd.f32 %v839_v20, %v834_v19 }
 0x35c   :  { %v247_v1 = vmul.f32 %v245_v56, %v202_v34 }
 0x35e   :  { %49 = vperm.xlu2 %680, %v26_v51  }
 0x366   :  { %37 = vperm.xlu2 %680, %v22_v52  }
 0x3b0   :  { %v250_v57 = vpop.permute.xlu2 %249 }
 0x3b1   :  { %v252_v58 = vmul.f32 %v250_v57, %v245_v56 }
 0x3b3   :  { %254 = vrot.lane.b32.xlu0 %v252_v58, %s738_s16 }
 0x3b8   :  { %v50_v59 = vpop.permute.xlu2 %49 }
 0x3b9   :  { %vm60_vm7 = vcmp.eq.s32.totalorder %v50_v59, %v821_v13 }
 0x3ba   :  { %v634_v61 = vsel %vm60_vm7, 1.0, %v736_v15 }
 0x3bb   :  { %643 = vmatmul.msk.f32.vlgmr.msra.gmra.mxu3 %vm89_vm1, %v634_v61  ;;  %52 = vperm.xlu0 %679, %v27_v60  }
 0x3bc   :  { %455 = vmatpush.msra.mxu3 %v808_v10 }
 0x3be   :  { %456 = vmatpush.msra.mxu3 %v816_v11 }
 0x3c0   :  { %v38_v62 = vpop.permute.xlu2 %37 }
 0x3c1   :  { %vm56_vm8 = vcmp.eq.s32.totalorder %v38_v62, %v821_v13 }
 0x3c2   :  { %v630_v63 = vsel %vm56_vm8, 1.0, %v736_v15 }
 0x3c3   :  { %639 = vmatmul.msk.f32.gmra.mxu0 %vm89_vm1, %v630_v63 }
 0x425   :  { %v255_v2 = vpop.permute.xlu0 %254 }
 0x426   :  { %v257_v3 = vadd.f32 %v255_v2, %v247_v1 }
 0x428   :  { %693 = vtanh.f32 %v257_v3 }
 0x42d   :  { %v53_v4 = vpop.permute.xlu0 %52 }
 0x42e   :  { %v694_v5 = vpop.eup %693  ;;  %vm61_vm9 = vcmp.eq.s32.totalorder %v53_v4, %v821_v13 }
 0x42f   :  { %v635_v6 = vsel %vm61_vm9, 1.0, %v736_v15  ;;  %260 = vrot.lane.b32.xlu1 %v694_v5, %s739_s4 }
 0x430   :  { %644 = vmatmul.msk.f32.gmra.mxu3 %vm89_vm1, %v635_v6 }
 0x43e   :  { %v897_v10 = vpop.f32.mrf.mxu3 }
 0x440   :  { %v141_v12 = vpop.f32.mrf.mxu0 }
 0x441   :  { %v142_v14 = vadd.f32 %v839_v20, %v141_v12 }
 0x4a1   :  { %v261_v7 = vpop.permute.xlu1 %260 }
 0x4a2   :  { %v892_v8 = vmul.f32 %v261_v7, %v245_v56 }
 0x4a4   :  { %272 = vrot.lane.b32.xlu1 %v892_v8, %s740_s21 }
 0x4b3   :  { %v899_v11 = vpop.f32.mrf.mxu3 }
 0x516   :  { %v273_v9 = vpop.permute.xlu1 %272 }
 0x517   :  { %646 = vmatmul.msk.f32.vlgmr.msrb.gmra.mxu3 %vm162_vm6, %v273_v9  ;;  %v151_v9 = vadd.f32 %v839_v20, %v866_v45 }
 0x59a   :  { %v293_v16 = vpop.f32.mrf.mxu3 }
 0x59b   :  { %v296_v17 = vadd.f32 %v293_v16, %v142_v14 }
 0x59d   :  { %695 = vtanh.f32 %v296_v17  ;;  %v297_v22 = vmul.f32 0.5, %v296_v17 }
 0x59f   :  { %697 = vtanh.f32 %v297_v22 }
 0x5a3   :  { %v696_v18 = vpop.eup %695 }
 0x5a4   :  { %304 = vrot.lane.b32.xlu0 %v696_v18, %s737_s15 }
 0x5a5   :  { %v698_v23 = vpop.eup %697 }
 0x5a6   :  { %v299_v24 = vadd.f32 1.0, %v698_v23 }
 0x5a8   :  { %v300_v25 = vmul.f32 0.5, %v299_v24 }
 0x5aa   :  { %v302_v30 = vmul.f32 %v300_v25, %v257_v3 }
 0x5ac   :  { %40 = vperm.xlu0 %679, %v23_v21  }
 0x616   :  { %v305_v26 = vpop.permute.xlu0 %304 }
 0x617   :  { %v307_v27 = vmul.f32 %v305_v26, %v300_v25 }
 0x619   :  { %309 = vrot.lane.b32.xlu1 %v307_v27, %s738_s16 }
 0x61e   :  { %v41_v28 = vpop.permute.xlu0 %40 }
 0x61f   :  { %vm57_vm10 = vcmp.eq.s32.totalorder %v41_v28, %v821_v13 }
 0x620   :  { %v631_v29 = vsel %vm57_vm10, 1.0, %v736_v15 }
 0x621   :  { %640 = vmatmul.msk.f32.gmra.mxu0 %vm89_vm1, %v631_v29 }
 0x68b   :  { %v310_v31 = vpop.permute.xlu1 %309 }
 0x68c   :  { %v312_v32 = vadd.f32 %v310_v31, %v302_v30  ;;  %v154_v31 = vadd.f32 %v839_v20, %v897_v10 }
 0x68e   :  { %699 = vtanh.f32 %v312_v32 }
 0x694   :  { %v700_v33 = vpop.eup %699 }
 0x695   :  { %315 = vrot.lane.b32.xlu2 %v700_v33, %s739_s4 }
 0x69e   :  { %v144_v13 = vpop.f32.mrf.mxu0 }
 0x69f   :  { %v145_v15 = vadd.f32 %v839_v20, %v144_v13 }
 0x6ef   :  { %v316_v34 = vpop.permute.xlu2 %315 }
 0x6f0   :  { %v911_v35 = vmul.f32 %v316_v34, %v300_v25 }
 0x6f2   :  { %327 = vrot.lane.b32.xlu1 %v911_v35, %s740_s21 }
 0x764   :  { %v328_v36 = vpop.permute.xlu1 %327 }
 0x765   :  { %647 = vmatmul.msk.f32.vlgmr.msra.gmra.mxu1 %vm162_vm6, %v328_v36 }
 0x7e2   :  { %v348_v37 = vpop.f32.mrf.mxu1 }
 0x7e3   :  { %v351_v38 = vadd.f32 %v348_v37, %v145_v15 }
 0x7e5   :  { %701 = vtanh.f32 %v351_v38  ;;  %v352_v41 = vmul.f32 0.5, %v351_v38 }
 0x7e7   :  { %703 = vtanh.f32 %v352_v41 }
 0x7eb   :  { %v702_v40 = vpop.eup %701 }
 0x7ec   :  { %359 = vrot.lane.b32.xlu2 %v702_v40, %s737_s15 }
 0x7ed   :  { %v704_v42 = vpop.eup %703 }
 0x7ee   :  { %v354_v43 = vadd.f32 1.0, %v704_v42 }
 0x7f0   :  { %v355_v44 = vmul.f32 0.5, %v354_v43 }
 0x7f2   :  { %v357_v48 = vmul.f32 %v355_v44, %v312_v32 }
 0x846   :  { %v360_v46 = vpop.permute.xlu2 %359 }
 0x847   :  { %v362_v47 = vmul.f32 %v360_v46, %v355_v44 }
 0x849   :  { %364 = vrot.lane.b32.xlu0 %v362_v47, %s738_s16  ;;  %v159_v47 = vld [vmem:[%s989_s1] sm:$0xff] }
 0x84a   :  { %vm209_vm11 = vcmp.eq.s32.totalorder %v159_v47, 1  ;;  %vm374_vm12 = vcmp.eq.s32.totalorder %v159_v47, 4  ;;  %vm539_vm13 = vcmp.eq.s32.totalorder %v159_v47, 7  ;;  %vm264_vm14 = vcmp.eq.s32.totalorder %v159_v47, 2 }
 0x84b   :  { %vm429_vm15 = vcmp.eq.s32.totalorder %v159_v47, 5  ;;  %vm319_vm0 = vcmp.eq.s32.totalorder %v159_v47, 3  ;;  %vm484_vm1 = vcmp.eq.s32.totalorder %v159_v47, 6  ;;  %vm594_vm2 = vcmp.eq.s32.totalorder %v159_v47, 8 }
 0x8bb   :  { %v365_v49 = vpop.permute.xlu0 %364 }
 0x8bc   :  { %v367_v50 = vadd.f32 %v365_v49, %v357_v48  ;;  %v210_v48 = vsel %vm209_vm11, 1, %v735_v0  ;;  %v375_v49 = vsel %vm374_vm12, 1, %v735_v0  ;;  %vm601_vm11 = vcmask 523648  }
 0x8be   :  { %705 = vtanh.f32 %v367_v50 }
 0x8c4   :  { %v706_v51 = vpop.eup %705 }
 0x8c5   :  { %370 = vrot.lane.b32.xlu1 %v706_v51, %s739_s4 }
 0x937   :  { %v371_v52 = vpop.permute.xlu1 %370 }
 0x938   :  { %v920_v53 = vmul.f32 %v371_v52, %v355_v44  ;;  %v157_v52 = vadd.f32 %v839_v20, %v899_v11 }
 0x93a   :  { %382 = vrot.lane.b32.xlu2 %v920_v53, %s740_s21 }
 0x994   :  { %v383_v54 = vpop.permute.xlu2 %382 }
 0x995   :  { %648 = vmatmul.msk.f32.vlgmr.msra.gmra.mxu2 %vm162_vm6, %v383_v54 }
 0xa18   :  { %v403_v56 = vpop.f32.mrf.mxu2 }
 0xa19   :  { %v406_v57 = vadd.f32 %v403_v56, %v148_v55 }
 0xa1b   :  { %707 = vtanh.f32 %v406_v57  ;;  %v407_v59 = vmul.f32 0.5, %v406_v57  ;;  %v265_v57 = vsel %vm264_vm14, 1, %v735_v0 }
 0xa1d   :  { %709 = vtanh.f32 %v407_v59 }
 0xa21   :  { %v708_v58 = vpop.eup %707 }
 0xa22   :  { %414 = vrot.lane.b32.xlu0 %v708_v58, %s737_s15  ;;  %v430_v58 = vsel %vm429_vm15, 1, %v735_v0 }
 0xa23   :  { %v710_v60 = vpop.eup %709 }
 0xa24   :  { %v409_v61 = vadd.f32 1.0, %v710_v60 }
 0xa26   :  { %v410_v62 = vmul.f32 0.5, %v409_v61 }
 0xa28   :  { %v412_v2 = vmul.f32 %v410_v62, %v367_v50  ;;  %v540_v50 = vsel %vm539_vm13, 1, %v735_v0 }
 0xa94   :  { %v415_v63 = vpop.permute.xlu0 %414 }
 0xa95   :  { %v417_v1 = vmul.f32 %v415_v63, %v410_v62  ;;  %v320_v63 = vsel %vm319_vm0, 1, %v735_v0 }
 0xa97   :  { %419 = vrot.lane.b32.xlu1 %v417_v1, %s738_s16  ;;  %v485_v1 = vsel %vm484_vm1, 1, %v735_v0 }
 0xb09   :  { %v420_v3 = vpop.permute.xlu1 %419 }
 0xb0a   :  { %v422_v4 = vadd.f32 %v420_v3, %v412_v2  ;;  %v595_v2 = vsel %vm594_vm2, 1, %v735_v0 }
 0xb0c   :  { %711 = vtanh.f32 %v422_v4 }
 0xb12   :  { %v712_v19 = vpop.eup %711 }
 0xb13   :  { %425 = vrot.lane.b32.xlu2 %v712_v19, %s739_s4 }
 0xb6d   :  { %v426_v5 = vpop.permute.xlu2 %425 }
 0xb6e   :  { %v930_v6 = vmul.f32 %v426_v5, %v410_v62 }
 0xb70   :  { %437 = vrot.lane.b32.xlu0 %v930_v6, %s740_s21 }
 0xbe2   :  { %v438_v7 = vpop.permute.xlu0 %437 }
 0xbe3   :  { %649 = vmatmul.msk.f32.vlgmr.msra.gmra.mxu3 %vm162_vm6, %v438_v7 }
 0xc66   :  { %v458_v12 = vpop.f32.mrf.mxu3 }
 0xc67   :  { %v461_v14 = vadd.f32 %v458_v12, %v151_v9 }
 0xc69   :  { %713 = vtanh.f32 %v461_v14  ;;  %v462_v17 = vmul.f32 0.5, %v461_v14 }
 0xc6b   :  { %715 = vtanh.f32 %v462_v17 }
 0xc6f   :  { %v714_v16 = vpop.eup %713 }
 0xc70   :  { %469 = vrot.lane.b32.xlu1 %v714_v16, %s737_s15 }
 0xc71   :  { %v716_v18 = vpop.eup %715 }
 0xc72   :  { %v464_v21 = vadd.f32 1.0, %v716_v18 }
 0xc74   :  { %v465_v22 = vmul.f32 0.5, %v464_v21 }
 0xc76   :  { %v467_v25 = vmul.f32 %v465_v22, %v422_v4 }
 0xce2   :  { %v470_v23 = vpop.permute.xlu1 %469 }
 0xce3   :  { %v472_v24 = vmul.f32 %v470_v23, %v465_v22 }
 0xce5   :  { %474 = vrot.lane.b32.xlu2 %v472_v24, %s738_s16 }
 0xd3f   :  { %v475_v26 = vpop.permute.xlu2 %474 }
 0xd40   :  { %v477_v27 = vadd.f32 %v475_v26, %v467_v25 }
 0xd42   :  { %717 = vtanh.f32 %v477_v27 }
 0xd48   :  { %v718_v45 = vpop.eup %717 }
 0xd49   :  { %480 = vrot.lane.b32.xlu0 %v718_v45, %s739_s4 }
 0xdbb   :  { %v481_v28 = vpop.permute.xlu0 %480 }
 0xdbc   :  { %v940_v29 = vmul.f32 %v481_v28, %v465_v22 }
 0xdbe   :  { %492 = vrot.lane.b32.xlu1 %v940_v29, %s740_s21 }
 0xe30   :  { %v493_v30 = vpop.permute.xlu1 %492 }
 0xe31   :  { %650 = vmatmul.msk.f32.vlgmr.msrb.gmra.mxu1 %vm162_vm6, %v493_v30 }
 0xeae   :  { %v513_v32 = vpop.f32.mrf.mxu1 }
 0xeaf   :  { %v516_v33 = vadd.f32 %v513_v32, %v154_v31 }
 0xeb1   :  { %719 = vtanh.f32 %v516_v33  ;;  %v517_v36 = vmul.f32 0.5, %v516_v33 }
 0xeb3   :  { %721 = vtanh.f32 %v517_v36 }
 0xeb7   :  { %v720_v34 = vpop.eup %719 }
 0xeb8   :  { %524 = vrot.lane.b32.xlu2 %v720_v34, %s737_s15 }
 0xeb9   :  { %v722_v13 = vpop.eup %721 }
 0xeba   :  { %v519_v15 = vadd.f32 1.0, %v722_v13 }
 0xebc   :  { %v520_v37 = vmul.f32 0.5, %v519_v15 }
 0xebe   :  { %v522_v41 = vmul.f32 %v520_v37, %v477_v27 }
 0xf12   :  { %v525_v38 = vpop.permute.xlu2 %524 }
 0xf13   :  { %v527_v40 = vmul.f32 %v525_v38, %v520_v37 }
 0xf15   :  { %529 = vrot.lane.b32.xlu0 %v527_v40, %s738_s16 }
 0xf87   :  { %v530_v42 = vpop.permute.xlu0 %529 }
 0xf88   :  { %v532_v43 = vadd.f32 %v530_v42, %v522_v41 }
 0xf8a   :  { %723 = vtanh.f32 %v532_v43 }
 0xf90   :  { %v724_v10 = vpop.eup %723 }
 0xf91   :  { %535 = vrot.lane.b32.xlu1 %v724_v10, %s739_s4 }
0x1003   :  { %v536_v44 = vpop.permute.xlu1 %535 }
0x1004   :  { %v950_v46 = vmul.f32 %v536_v44, %v520_v37 }
0x1006   :  { %547 = vrot.lane.b32.xlu2 %v950_v46, %s740_s21 }
0x100e   :  { %212 = vperm.xlu2 %680, %v210_v48  }
0x1016   :  { %377 = vperm.xlu2 %680, %v375_v49  }
0x101e   :  { %542 = vperm.xlu2 %680, %v540_v50  }
0x1060   :  { %v548_v51 = vpop.permute.xlu2 %547 }
0x1061   :  { %651 = vmatmul.msk.f32.vlgmr.msrb.gmra.mxu2 %vm162_vm6, %v548_v51 }
0x1068   :  { %v213_v7 = vpop.permute.xlu2 %212 }
0x1069   :  { %vm214_vm3 = vcmp.eq.s32.totalorder %v213_v7, 1 }
0x106a   :  { %v215_v17 = vsel %vm214_vm3, %v851_v39, 0.0 }
0x1070   :  { %v378_v14 = vpop.permute.xlu2 %377 }
0x1071   :  { %vm379_vm7 = vcmp.eq.s32.totalorder %v378_v14, 1 }
0x1078   :  { %v543_v23 = vpop.permute.xlu2 %542 }
0x1079   :  { %vm544_vm10 = vcmp.eq.s32.totalorder %v543_v23, 1 }
0x10e4   :  { %v568_v54 = vpop.f32.mrf.mxu2 }
0x10e5   :  { %v571_v55 = vadd.f32 %v568_v54, %v157_v52 }
0x10e7   :  { %725 = vtanh.f32 %v571_v55  ;;  %v572_v59 = vmul.f32 0.5, %v571_v55 }
0x10e9   :  { %727 = vtanh.f32 %v572_v59 }
0x10ed   :  { %v726_v56 = vpop.eup %725 }
0x10ee   :  { %579 = vrot.lane.b32.xlu0 %v726_v56, %s737_s15 }
0x10ef   :  { %v728_v60 = vpop.eup %727 }
0x10f0   :  { %v574_v61 = vadd.f32 1.0, %v728_v60 }
0x10f2   :  { %v575_v62 = vmul.f32 0.5, %v574_v61 }
0x10f4   :  { %v577_v3 = vmul.f32 %v575_v62, %v532_v43 }
0x10f6   :  { %267 = vperm.xlu0 %679, %v265_v57  }
0x10fe   :  { %432 = vperm.xlu0 %679, %v430_v58  }
0x1160   :  { %v580_v20 = vpop.permute.xlu0 %579 }
0x1161   :  { %v582_v11 = vmul.f32 %v580_v20, %v575_v62 }
0x1163   :  { %584 = vrot.lane.b32.xlu1 %v582_v11, %s738_s16 }
0x1168   :  { %v268_v12 = vpop.permute.xlu0 %267 }
0x1169   :  { %vm269_vm4 = vcmp.eq.s32.totalorder %v268_v12, 1 }
0x116a   :  { %v270_v0 = vsel %vm269_vm4, %v892_v8, %v215_v17 }
0x116b   :  { %322 = vperm.xlu1 %681, %v320_v63  }
0x1170   :  { %v433_v18 = vpop.permute.xlu0 %432 }
0x1171   :  { %vm434_vm9 = vcmp.eq.s32.totalorder %v433_v18, 1 }
0x1173   :  { %487 = vperm.xlu1 %681, %v485_v1  }
0x117b   :  { %597 = vperm.xlu1 %681, %v595_v2  }
0x11d5   :  { %v585_v4 = vpop.permute.xlu1 %584 }
0x11d6   :  { %v587_v19 = vadd.f32 %v585_v4, %v577_v3 }
0x11d8   :  { %729 = vtanh.f32 %v587_v19 }
0x11dd   :  { %v323_v9 = vpop.permute.xlu1 %322 }
0x11de   :  { %v730_v5 = vpop.eup %729  ;;  %vm324_vm5 = vcmp.eq.s32.totalorder %v323_v9, 1 }
0x11df   :  { %590 = vrot.lane.b32.xlu0 %v730_v5, %s739_s4  ;;  %v325_v21 = vsel %vm324_vm5, %v911_v35, %v270_v0 }
0x11e0   :  { %v380_v22 = vsel %vm379_vm7, %v920_v53, %v325_v21 }
0x11e1   :  { %v435_v24 = vsel %vm434_vm9, %v930_v6, %v380_v22 }
0x11e5   :  { %v488_v16 = vpop.permute.xlu1 %487 }
0x11e6   :  { %vm489_vm8 = vcmp.eq.s32.totalorder %v488_v16, 1 }
0x11e7   :  { %v490_v25 = vsel %vm489_vm8, %v940_v29, %v435_v24 }
0x11e8   :  { %v545_v39 = vsel %vm544_vm10, %v950_v46, %v490_v25 }
0x11ed   :  { %v598_v26 = vpop.permute.xlu1 %597 }
0x11ee   :  { %vm599_vm12 = vcmp.eq.s32.totalorder %v598_v26, 1 }
0x1251   :  { %v591_v27 = vpop.permute.xlu0 %590 }
0x1252   :  { %v593_v45 = vmul.f32 %v591_v27, %v575_v62 }
0x1254   :  { %v600_v8 = vsel %vm599_vm12, %v593_v45, %v545_v39 }
0x1255   :  { %v602_v35 = vsel %vm601_vm11, %v600_v8, -inf }
0x1256   :  { %603 = vmax.xlane.f32.xlu2 %v602_v35 }
0x12c9   :  { %v604_v28 = vpop.xlane.xlu2 %603 }
0x12ca   :  { %v605_v53 = vsub.f32 %v600_v8, %v604_v28 }
0x12cc   :  { %v606_v30 = vmul.f32 1.442695, %v605_v53 }
0x12ce   :  { %731 = vpow2.f32 %v606_v30 }
0x12d4   :  { %v732_v31 = vpop.eup %731 }
0x12d5   :  { %609 = vrot.lane.b32.xlu0 %v732_v31, %s740_s21 }
0x1347   :  { %v610_v6 = vpop.permute.xlu0 %609 }
0x1348   :  { %v612_v29 = vsel %vm162_vm6, %v610_v6, 0.0 }
0x1349   :  { %613 = vadd.xlane.f32.xlu1 %v612_v29 }
0x13bc   :  { %v614_v32 = vpop.xlane.xlu1 %613 }
0x13bd   :  { %733 = vlog2.f32 %v614_v32 }
0x13c3   :  { %v734_v33 = vpop.eup %733 }
0x13c4   :  { %v616_v34 = vmul.f32 0.6931472, %v734_v33 }
0x13c6   :  { %v617_v36 = vadd.f32 %v616_v34, %v604_v28 }
0x13c8   :  { %v618_v13 = vsub.f32 %v600_v8, %v617_v36 }
0x13ca   :  { %620 = vrot.lane.b32.xlu0 %v618_v13, %s740_s21 }
0x143c   :  { %v621_v15 = vpop.permute.xlu0 %620 }
0x143d   :  { %623 = vst.msk [vmem:[%s990_s5] sm:$0xff] %vm162_vm6, %v621_v15 }

</bundles_post_ra>
